<compile_context>
chip_gen: v7x
topology: tpu7x:2x2x1
jax: 0.10.0
libtpu: 0.0.40
codegen_flags: <defaults>
</compile_context>

<pallas_src>
import jax
import jax.numpy as jnp
from jax.experimental import pallas as pl
from jax.experimental.pallas import tpu as pltpu


# ------------------------------- kernel ------------------------------------ #

def _mlp_kernel(x_ref, w1_ref, b1_ref, w2_ref, b2_ref, w3_ref, b3_ref,
                w4_ref, b4_ref, w5_ref, b5_ref, o_ref):
    """Fused forward for one batch block.

    x_ref: (inch*TB, infeature)   channel-major within the block
           (rows [r*TB, (r+1)*TB) are channel r for the TB samples).
    o_ref: (outfeature, TB)       lane-dense output tile.
    """
    tb = o_ref.shape[1]
    inch = x_ref.shape[0] // tb

    # ---- feature stage: one matmul per layer with M = inch*TB ----
    h = jnp.dot(x_ref[...], w1_ref[...], preferred_element_type=jnp.float32)
    h = jnp.maximum(h + b1_ref[...], 0.0)              # (inch*TB, emb*8)
    f = jnp.dot(h, w2_ref[...], preferred_element_type=jnp.float32)
    f = jnp.maximum(f + b2_ref[...], 0.0)              # (inch*TB, emb)

    # torch's x.view(-1): per sample, [ch0 emb | ch1 emb | ... ] along lanes.
    # Channel slabs are contiguous sublane ranges -> lane concat (XLU slack).
    fflat = jnp.concatenate(
        [f[r * tb:(r + 1) * tb, :] for r in range(inch)], axis=-1
    )                                                   # (TB, inch*emb)

    # ---- netlist stage: single K = inch*emb matmul + two small matmuls ----
    g = jnp.dot(fflat, w3_ref[...], preferred_element_type=jnp.float32)
    g = jnp.maximum(g + b3_ref[...], 0.0)               # (TB, nhid)
    g = jnp.dot(g, w4_ref[...], preferred_element_type=jnp.float32)
    g = jnp.maximum(g + b4_ref[...], 0.0)               # (TB, nhid//8)
    g = jnp.dot(g, w5_ref[...], preferred_element_type=jnp.float32)
    # Lane-dense store: (TB, outfeature) -> (outfeature, TB) rides the XLU.
    o_ref[...] = (g + b5_ref[...]).T


# ------------------------------ wrappers ------------------------------------ #

def _round_up(x, m):
    return -(-x // m) * m


def _resident(arr):
    """Whole array VMEM-resident: same (full) block at every grid step."""
    n = arr.ndim
    return pl.BlockSpec(arr.shape, lambda g, _n=n: (0,) * _n)


def _choose_block_b(B):
    """Generation-aware batch-block size.

    v5e/v6e (single TensorCore): one big block (grid steps are pure overhead).
    v7x (two TensorCores): >=2 'parallel' grid steps so both cores get work;
    blocks are multiples of 128 so the output tile stays lane-dense.
    """
    kind = ""
    try:
        kind = jax.devices()[0].device_kind.lower()
    except Exception:
        pass
    two_tc = ("v7" in kind) or ("7x" in kind)

    if not two_tc and B <= 512:
        return _round_up(max(B, 1), 8)          # single block, full-dim tiles
    min_steps = 2 if (two_tc and B > 8) else 1
    steps = max(min_steps, pl.cdiv(B, 512))     # cap block at 512 rows
    return _round_up(pl.cdiv(B, steps), 128)


def _cost_estimate(batch, inch, infeature, emb8, emb, nhid, nhid8, outfeature):
    flops = 2 * batch * (inch * infeature * emb8 + inch * emb8 * emb
                         + inch * emb * nhid + nhid * nhid8 + nhid8 * outfeature)
    act_bytes = 4 * batch * (inch * infeature + outfeature)
    w_bytes = 4 * (infeature * emb8 + emb8 + emb8 * emb + emb
                   + inch * emb * nhid + nhid + nhid * nhid8 + nhid8
                   + nhid8 * outfeature + outfeature)
    return pl.CostEstimate(flops=flops, transcendentals=0,
                           bytes_accessed=act_bytes + w_bytes)


def mlp_forward_batched(xb, params, *, block_b=None):
    """Throughput path: xb (B, inch, infeature) f32 -> (B, outfeature) f32."""
    w1, b1, w2, b2, w3, b3, w4, b4, w5, b5 = params
    B, inch, infeature = xb.shape
    emb8 = w1.shape[1]
    emb = w2.shape[1]
    nhid = w3.shape[1]
    nhid8 = w4.shape[1]
    outfeature = w5.shape[1]

    if block_b is None:
        block_b = _choose_block_b(B)
    block_b = _round_up(int(block_b), 8)
    if pl.cdiv(B, block_b) > 1:                 # multi-block: lane-dense tiles
        block_b = _round_up(block_b, 128)
    n_blocks = pl.cdiv(B, block_b)
    Bp = n_blocks * block_b

    xb_p = xb if Bp == B else jnp.concatenate(
        [xb, jnp.zeros((Bp - B, inch, infeature), xb.dtype)], axis=0)

    # Host prep (tiny, one XLA op): channel-major within each batch block so
    # the kernel reads one contiguous 2-D (inch*block_b, infeature) slab per
    # grid step and runs layers 1-2 as single M = inch*block_b matmuls.
    x_cm = (xb_p.reshape(n_blocks, block_b, inch, infeature)
                 .transpose(0, 2, 1, 3)
                 .reshape(n_blocks * inch * block_b, infeature))

    out_t = pl.pallas_call(
        _mlp_kernel,
        out_shape=jax.ShapeDtypeStruct((outfeature, Bp), jnp.float32),
        grid=(n_blocks,),
        in_specs=[
            pl.BlockSpec((inch * block_b, infeature), lambda g: (g, 0)),
            _resident(w1), _resident(b1), _resident(w2), _resident(b2),
            _resident(w3), _resident(b3), _resident(w4), _resident(b4),
            _resident(w5), _resident(b5),
        ],
        out_specs=pl.BlockSpec((outfeature, block_b), lambda g: (0, g)),
        compiler_params=pltpu.CompilerParams(
            dimension_semantics=("parallel",)),   # shards batch blocks on v7x
        cost_estimate=_cost_estimate(Bp, inch, infeature, emb8, emb,
                                     nhid, nhid8, outfeature),
    )(x_cm, w1, b1, w2, b2, w3, b3, w4, b4, w5, b5)

    # Lane-dense (outfeature, Bp) -> (B, outfeature) on the host.
    return out_t.T[:B]


def mlp_forward(x, params):
    """Exact module forward: x (inch, infeature) f32 -> (outfeature,) f32.

    Routed through the batched kernel (single compiled variant); latency here
    is dominated by fixed pallas_call cost regardless of block shape."""
    return mlp_forward_batched(x[None], params)[0]


def init_params(key, infeature, inch, emb, nhid, outfeature):
    """PyTorch-Linear-style init: U(-1/sqrt(in), 1/sqrt(in)).
    Weights stored transposed: (in_features, out_features); biases (1, out)."""
    dims = [
        (infeature, emb * 8),     # feature.0
        (emb * 8, emb),           # feature.3
        (emb * inch, nhid),       # netlist.0
        (nhid, nhid // 8),        # netlist.3
        (nhid // 8, outfeature),  # netlist.6
    ]
    params = []
    for (fan_in, fan_out) in dims:
        key, kw, kb = jax.random.split(key, 3)
        bound = 1.0 / jnp.sqrt(jnp.float32(fan_in))
        w = jax.random.uniform(kw, (fan_in, fan_out), jnp.float32, -bound, bound)
        b = jax.random.uniform(kb, (1, fan_out), jnp.float32, -bound, bound)
        params.extend([w, b])
    return params


# pure-JAX reference for sanity checking
def mlp_reference(x, params):
    w1, b1, w2, b2, w3, b3, w4, b4, w5, b5 = params
    h = jnp.maximum(x @ w1 + b1, 0.0)
    h = jnp.maximum(h @ w2 + b2, 0.0)
    f = h.reshape(1, -1)
    f = jnp.maximum(f @ w3 + b3, 0.0)
    f = jnp.maximum(f @ w4 + b4, 0.0)
    return (f @ w5 + b5).reshape(-1)


# -------------------------------- main -------------------------------------- #

if __name__ == "__main__":
    # module args: infeature=32, inch=4, emb=16, nhid=64, outfeature=8
    infeature, inch, emb, nhid, outfeature = 32, 4, 16, 64, 8

    key = jax.random.PRNGKey(0)
    kx, kb, kp = jax.random.split(key, 3)
    params = init_params(kp, infeature, inch, emb, nhid, outfeature)

    # --- single-sample forward (exact module semantics) ---
    x = jax.random.normal(kx, (inch, infeature), jnp.float32)
    out = jax.block_until_ready(mlp_forward(x, params))
    ref = mlp_reference(x, params)
    assert out.shape == (outfeature,), out.shape
    assert jnp.allclose(out, ref, atol=1e-3, rtol=1e-3), (out, ref)

    # --- batched forward (throughput path) ---
    B = 256
    xb = jax.random.normal(kb, (B, inch, infeature), jnp.float32)
    outb = jax.block_until_ready(mlp_forward_batched(xb, params))
    refb = jax.vmap(lambda xi: mlp_reference(xi, params))(xb)
    assert outb.shape == (B, outfeature), outb.shape
    assert jnp.allclose(outb, refb, atol=1e-3, rtol=1e-3), (outb, refb)

    # --- explicit multi-block path (exercises grid > 1 / lane-dense tiles) ---
    outb2 = jax.block_until_ready(mlp_forward_batched(xb, params, block_b=128))
    assert jnp.allclose(outb2, refb, atol=1e-3, rtol=1e-3)

    print("KERNEL_OK")
</pallas_src>

<mosaic_0001>
module attributes {stable_mosaic.version = 11 : i64} {
  func.func @_mlp_kernel(%arg0: i32, %arg1: memref<32x32xf32, #tpu.memory_space<vmem>>, %arg2: memref<32x128xf32, #tpu.memory_space<vmem>>, %arg3: memref<1x128xf32, #tpu.memory_space<vmem>>, %arg4: memref<128x16xf32, #tpu.memory_space<vmem>>, %arg5: memref<1x16xf32, #tpu.memory_space<vmem>>, %arg6: memref<64x64xf32, #tpu.memory_space<vmem>>, %arg7: memref<1x64xf32, #tpu.memory_space<vmem>>, %arg8: memref<64x8xf32, #tpu.memory_space<vmem>>, %arg9: memref<1x8xf32, #tpu.memory_space<vmem>>, %arg10: memref<8x8xf32, #tpu.memory_space<vmem>>, %arg11: memref<1x8xf32, #tpu.memory_space<vmem>>, %arg12: memref<8x8xf32, #tpu.memory_space<vmem>>) attributes {dimension_semantics = [#tpu.dimension_semantics<parallel>], iteration_bounds = array<i64: 1>, scalar_prefetch = 0 : i64, scratch_operands = 0 : i64, tpu.core_type = #tpu.core_type<tc>, window_params = [{transform_indices = @transform_0, window_bounds = array<i64: 32, 32>}, {pipeline_mode = #tpu.pipeline_mode<synchronous>, transform_indices = @transform_1, window_bounds = array<i64: 32, 128>}, {pipeline_mode = #tpu.pipeline_mode<synchronous>, transform_indices = @transform_2, window_bounds = array<i64: 1, 128>}, {pipeline_mode = #tpu.pipeline_mode<synchronous>, transform_indices = @transform_3, window_bounds = array<i64: 128, 16>}, {pipeline_mode = #tpu.pipeline_mode<synchronous>, transform_indices = @transform_4, window_bounds = array<i64: 1, 16>}, {pipeline_mode = #tpu.pipeline_mode<synchronous>, transform_indices = @transform_5, window_bounds = array<i64: 64, 64>}, {pipeline_mode = #tpu.pipeline_mode<synchronous>, transform_indices = @transform_6, window_bounds = array<i64: 1, 64>}, {pipeline_mode = #tpu.pipeline_mode<synchronous>, transform_indices = @transform_7, window_bounds = array<i64: 64, 8>}, {pipeline_mode = #tpu.pipeline_mode<synchronous>, transform_indices = @transform_8, window_bounds = array<i64: 1, 8>}, {pipeline_mode = #tpu.pipeline_mode<synchronous>, transform_indices = @transform_9, window_bounds = array<i64: 8, 8>}, {pipeline_mode = #tpu.pipeline_mode<synchronous>, transform_indices = @transform_10, window_bounds = array<i64: 1, 8>}, {transform_indices = @transform_11, window_bounds = array<i64: 8, 8>}]} {
    %c0 = arith.constant 0 : index
    %c0_0 = arith.constant 0 : index
    %0 = vector.load %arg1[%c0, %c0_0] : memref<32x32xf32, #tpu.memory_space<vmem>>, vector<32x32xf32>
    %c0_1 = arith.constant 0 : index
    %c0_2 = arith.constant 0 : index
    %1 = vector.load %arg2[%c0_1, %c0_2] : memref<32x128xf32, #tpu.memory_space<vmem>>, vector<32x128xf32>
    %cst = arith.constant dense<0.000000e+00> : vector<32x128xf32>
    %2 = tpu.matmul %0, %1, %cst {dimension_numbers = #tpu.dot_dimension_numbers<[1], [0], [0], [1], [0, 0, 1, 1], [], []>} : vector<32x32xf32>, vector<32x128xf32>, vector<32x128xf32> -> vector<32x128xf32>
    %c0_3 = arith.constant 0 : index
    %c0_4 = arith.constant 0 : index
    %3 = vector.load %arg3[%c0_3, %c0_4] : memref<1x128xf32, #tpu.memory_space<vmem>>, vector<1x128xf32>
    %4 = vector.broadcast %3 : vector<1x128xf32> to vector<32x128xf32>
    %5 = arith.addf %2, %4 : vector<32x128xf32>
    %cst_5 = arith.constant 0.000000e+00 : f32
    %6 = vector.broadcast %cst_5 : f32 to vector<32x128xf32>
    %7 = arith.maximumf %5, %6 : vector<32x128xf32>
    %c0_6 = arith.constant 0 : index
    %c0_7 = arith.constant 0 : index
    %8 = vector.load %arg4[%c0_6, %c0_7] : memref<128x16xf32, #tpu.memory_space<vmem>>, vector<128x16xf32>
    %cst_8 = arith.constant dense<0.000000e+00> : vector<32x16xf32>
    %9 = tpu.matmul %7, %8, %cst_8 {dimension_numbers = #tpu.dot_dimension_numbers<[1], [0], [0], [1], [0, 0, 1, 1], [], []>} : vector<32x128xf32>, vector<128x16xf32>, vector<32x16xf32> -> vector<32x16xf32>
    %c0_9 = arith.constant 0 : index
    %c0_10 = arith.constant 0 : index
    %10 = vector.load %arg5[%c0_9, %c0_10] : memref<1x16xf32, #tpu.memory_space<vmem>>, vector<1x16xf32>
    %11 = vector.broadcast %10 : vector<1x16xf32> to vector<32x16xf32>
    %12 = arith.addf %9, %11 : vector<32x16xf32>
    %cst_11 = arith.constant 0.000000e+00 : f32
    %13 = vector.broadcast %cst_11 : f32 to vector<32x16xf32>
    %14 = arith.maximumf %12, %13 : vector<32x16xf32>
    %15 = vector.extract_strided_slice %14 {offsets = [0, 0], sizes = [8, 16], strides = [1, 1]} : vector<32x16xf32> to vector<8x16xf32>
    %16 = vector.extract_strided_slice %14 {offsets = [8, 0], sizes = [8, 16], strides = [1, 1]} : vector<32x16xf32> to vector<8x16xf32>
    %17 = vector.extract_strided_slice %14 {offsets = [16, 0], sizes = [8, 16], strides = [1, 1]} : vector<32x16xf32> to vector<8x16xf32>
    %18 = vector.extract_strided_slice %14 {offsets = [24, 0], sizes = [8, 16], strides = [1, 1]} : vector<32x16xf32> to vector<8x16xf32>
    %19 = tpu.concatenate %15, %16, %17, %18 in 1 : vector<8x16xf32>, vector<8x16xf32>, vector<8x16xf32>, vector<8x16xf32> -> vector<8x64xf32>
    %c0_12 = arith.constant 0 : index
    %c0_13 = arith.constant 0 : index
    %20 = vector.load %arg6[%c0_12, %c0_13] : memref<64x64xf32, #tpu.memory_space<vmem>>, vector<64x64xf32>
    %cst_14 = arith.constant dense<0.000000e+00> : vector<8x64xf32>
    %21 = tpu.matmul %19, %20, %cst_14 {dimension_numbers = #tpu.dot_dimension_numbers<[1], [0], [0], [1], [0, 0, 1, 1], [], []>} : vector<8x64xf32>, vector<64x64xf32>, vector<8x64xf32> -> vector<8x64xf32>
    %c0_15 = arith.constant 0 : index
    %c0_16 = arith.constant 0 : index
    %22 = vector.load %arg7[%c0_15, %c0_16] : memref<1x64xf32, #tpu.memory_space<vmem>>, vector<1x64xf32>
    %23 = vector.broadcast %22 : vector<1x64xf32> to vector<8x64xf32>
    %24 = arith.addf %21, %23 : vector<8x64xf32>
    %cst_17 = arith.constant 0.000000e+00 : f32
    %25 = vector.broadcast %cst_17 : f32 to vector<8x64xf32>
    %26 = arith.maximumf %24, %25 : vector<8x64xf32>
    %c0_18 = arith.constant 0 : index
    %c0_19 = arith.constant 0 : index
    %27 = vector.load %arg8[%c0_18, %c0_19] : memref<64x8xf32, #tpu.memory_space<vmem>>, vector<64x8xf32>
    %cst_20 = arith.constant dense<0.000000e+00> : vector<8x8xf32>
    %28 = tpu.matmul %26, %27, %cst_20 {dimension_numbers = #tpu.dot_dimension_numbers<[1], [0], [0], [1], [0, 0, 1, 1], [], []>} : vector<8x64xf32>, vector<64x8xf32>, vector<8x8xf32> -> vector<8x8xf32>
    %c0_21 = arith.constant 0 : index
    %c0_22 = arith.constant 0 : index
    %29 = vector.load %arg9[%c0_21, %c0_22] : memref<1x8xf32, #tpu.memory_space<vmem>>, vector<1x8xf32>
    %30 = vector.broadcast %29 : vector<1x8xf32> to vector<8x8xf32>
    %31 = arith.addf %28, %30 : vector<8x8xf32>
    %cst_23 = arith.constant 0.000000e+00 : f32
    %32 = vector.broadcast %cst_23 : f32 to vector<8x8xf32>
    %33 = arith.maximumf %31, %32 : vector<8x8xf32>
    %c0_24 = arith.constant 0 : index
    %c0_25 = arith.constant 0 : index
    %34 = vector.load %arg10[%c0_24, %c0_25] : memref<8x8xf32, #tpu.memory_space<vmem>>, vector<8x8xf32>
    %cst_26 = arith.constant dense<0.000000e+00> : vector<8x8xf32>
    %35 = tpu.matmul %33, %34, %cst_26 {dimension_numbers = #tpu.dot_dimension_numbers<[1], [0], [0], [1], [0, 0, 1, 1], [], []>} : vector<8x8xf32>, vector<8x8xf32>, vector<8x8xf32> -> vector<8x8xf32>
    %c0_27 = arith.constant 0 : index
    %c0_28 = arith.constant 0 : index
    %36 = vector.load %arg11[%c0_27, %c0_28] : memref<1x8xf32, #tpu.memory_space<vmem>>, vector<1x8xf32>
    %37 = vector.broadcast %36 : vector<1x8xf32> to vector<8x8xf32>
    %38 = arith.addf %35, %37 : vector<8x8xf32>
    %39 = tpu.transpose %38, [1, 0] : vector<8x8xf32> -> vector<8x8xf32>
    %c0_29 = arith.constant 0 : index
    %c0_30 = arith.constant 0 : index
    %40 = vector.load %arg12[%c0_29, %c0_30] : memref<8x8xf32, #tpu.memory_space<vmem>>, vector<8x8xf32>
    tpu.vector_store %arg12[%c0_29, %c0_30], %39 {strides = array<i32>} : memref<8x8xf32, #tpu.memory_space<vmem>>, vector<8x8xf32>,
    return
  }
  func.func @transform_0(%arg0: i32) -> (i32, i32) {
    %c0_i32 = arith.constant 0 : i32
    %c0_i32_0 = arith.constant 0 : i32
    return %arg0, %c0_i32 : i32, i32
  }
  func.func @transform_1(%arg0: i32) -> (i32, i32) {
    %c0_i32 = arith.constant 0 : i32
    %c0_i32_0 = arith.constant 0 : i32
    %c0_i32_1 = arith.constant 0 : i32
    return %c0_i32, %c0_i32_0 : i32, i32
  }
  func.func @transform_2(%arg0: i32) -> (i32, i32) {
    %c0_i32 = arith.constant 0 : i32
    %c0_i32_0 = arith.constant 0 : i32
    %c0_i32_1 = arith.constant 0 : i32
    return %c0_i32, %c0_i32_0 : i32, i32
  }
  func.func @transform_3(%arg0: i32) -> (i32, i32) {
    %c0_i32 = arith.constant 0 : i32
    %c0_i32_0 = arith.constant 0 : i32
    %c0_i32_1 = arith.constant 0 : i32
    return %c0_i32, %c0_i32_0 : i32, i32
  }
  func.func @transform_4(%arg0: i32) -> (i32, i32) {
    %c0_i32 = arith.constant 0 : i32
    %c0_i32_0 = arith.constant 0 : i32
    %c0_i32_1 = arith.constant 0 : i32
    return %c0_i32, %c0_i32_0 : i32, i32
  }
  func.func @transform_5(%arg0: i32) -> (i32, i32) {
    %c0_i32 = arith.constant 0 : i32
    %c0_i32_0 = arith.constant 0 : i32
    %c0_i32_1 = arith.constant 0 : i32
    return %c0_i32, %c0_i32_0 : i32, i32
  }
  func.func @transform_6(%arg0: i32) -> (i32, i32) {
    %c0_i32 = arith.constant 0 : i32
    %c0_i32_0 = arith.constant 0 : i32
    %c0_i32_1 = arith.constant 0 : i32
    return %c0_i32, %c0_i32_0 : i32, i32
  }
  func.func @transform_7(%arg0: i32) -> (i32, i32) {
    %c0_i32 = arith.constant 0 : i32
    %c0_i32_0 = arith.constant 0 : i32
    %c0_i32_1 = arith.constant 0 : i32
    return %c0_i32, %c0_i32_0 : i32, i32
  }
  func.func @transform_8(%arg0: i32) -> (i32, i32) {
    %c0_i32 = arith.constant 0 : i32
    %c0_i32_0 = arith.constant 0 : i32
    %c0_i32_1 = arith.constant 0 : i32
    return %c0_i32, %c0_i32_0 : i32, i32
  }
  func.func @transform_9(%arg0: i32) -> (i32, i32) {
    %c0_i32 = arith.constant 0 : i32
    %c0_i32_0 = arith.constant 0 : i32
    %c0_i32_1 = arith.constant 0 : i32
    return %c0_i32, %c0_i32_0 : i32, i32
  }
  func.func @transform_10(%arg0: i32) -> (i32, i32) {
    %c0_i32 = arith.constant 0 : i32
    %c0_i32_0 = arith.constant 0 : i32
    %c0_i32_1 = arith.constant 0 : i32
    return %c0_i32, %c0_i32_0 : i32, i32
  }
  func.func @transform_11(%arg0: i32) -> (i32, i32) {
    %c0_i32 = arith.constant 0 : i32
    %c0_i32_0 = arith.constant 0 : i32
    return %c0_i32, %arg0 : i32, i32
  }
}

</mosaic_0001>

<bundles_post_ra>
// kernel: tpu_custom_call.1
= control target key start
LH: loop header
LB: loop body
LE: loop exit
PB: predicated region body
PF: predicated region fallthrough
CT: control target
= control target key end

     0   :  { %vm54_vm0 = vcmask 261120   ;;  %s1078_s0 = inlined_call_operand.vmem [shape: f32[32,32], index: 0, kind: input, shape index: {}]   ;;  %s1079_s1 = inlined_call_operand.vmem [shape: f32[32,128], index: 1, kind: input, shape index: {}]   ;;  %s1080_s2 = inlined_call_operand.vmem [shape: f32[1,128], index: 2, kind: input, shape index: {}]   ;;  %s1081_s3 = inlined_call_operand.vmem [shape: f32[128,16], index: 3, kind: input, shape index: {}]   ;;  %s1082_s4 = inlined_call_operand.vmem [shape: f32[1,16], index: 4, kind: input, shape index: {}]   ;;  %s1083_s5 = inlined_call_operand.vmem [shape: f32[64,64], index: 5, kind: input, shape index: {}]   ;;  %s1084_s6 = inlined_call_operand.vmem [shape: f32[1,64], index: 6, kind: input, shape index: {}]   ;;  %s1085_s7 = inlined_call_operand.vmem [shape: f32[64,8], index: 7, kind: input, shape index: {}]   ;;  %s1086_s8 = inlined_call_operand.vmem [shape: f32[1,8], index: 8, kind: input, shape index: {}]   ;;  %s1087_s9 = inlined_call_operand.vmem [shape: f32[8,8], index: 9, kind: input, shape index: {}]   ;;  %s1088_s10 = inlined_call_operand.vmem [shape: f32[1,8], index: 10, kind: input, shape index: {}]   ;;  %s1089_s11 = inlined_call_operand.hbm [shape: f32[8,8], index: 11, kind: output, shape index: {}]  }
   0x1   :  { %v43_v0 = vld [vmem:[%s1079_s1] sm:$0xff]  ;;  %v44_v1 = vld [vmem:[%s1079_s1 + $0x8] sm:$0xff]  ;;  %v45_v2 = vld [vmem:[%s1079_s1 + $0x10] sm:$0xff] }
   0x2   :  { %v748_v3 = vpack.c.bf16 %v44_v1, %v43_v0  ;;  %v46_v4 = vld [vmem:[%s1079_s1 + $0x18] sm:$0xff]  ;;  %v39_v5 = vld [vmem:[%s1078_s0] sm:$0xff]  ;;  %v157_v8 = vld [vmem:[%s1081_s3 + $0x8] sm:$0xff] }
   0x3   :  { %v752_v6 = vpack.c.bf16 %v46_v4, %v45_v2  ;;  %661 = vmatprep.mubr.msk.f32.mxu0 %vm54_vm0, %v39_v5  ;;  %v156_v7 = vld [vmem:[%s1081_s3] sm:$0xff]  ;;  %v158_v9 = vld [vmem:[%s1081_s3 + $0x10] sm:$0xff]  ;;  %v159_v10 = vld [vmem:[%s1081_s3 + $0x18] sm:$0xff] }
   0x4   :  { %749 = vmatprep.subr.bf16.mxu0 %v748_v3  ;;  %v756_v11 = vpack.c.bf16 %v157_v8, %v156_v7  ;;  %v760_v12 = vpack.c.bf16 %v159_v10, %v158_v9  ;;  %v160_v13 = vld [vmem:[%s1081_s3 + $0x20] sm:$0xff]  ;;  %v161_v14 = vld [vmem:[%s1081_s3 + $0x28] sm:$0xff] }
   0x5   :  { %751 = vmatpush3.bf16.msra.mxu0 %v748_v3 }
   0x6   :  { %753 = vmatprep.subr.bf16.mxu0 %v752_v6  ;;  %757 = vmatprep.subr.bf16.mxu1 %v756_v11 }
   0x7   :  { %759 = vmatpush3.bf16.msra.mxu1 %v756_v11 }
   0x8   :  { %16 = vsyncpa [#allocation3], 0  ;;  %v40_v15 = vld [vmem:[%s1078_s0 + $0x8] sm:$0xff]  ;;  %761 = vmatprep.subr.bf16.mxu1 %v760_v12  ;;  %v764_v16 = vpack.c.bf16 %v161_v14, %v160_v13  ;;  %v41_v17 = vld [vmem:[%s1078_s0 + $0x10] sm:$0xff]  ;;  %v843_v50 = vmov 0.0|0.0   ;;  %vm844_vm1 = vmmov 0  }
   0x9   :  { %755 = vmatpush3.bf16.msra.mxu0 %v752_v6  ;;  %v162_v18 = vld [vmem:[%s1081_s3 + $0x30] sm:$0xff]  ;;  %v163_v19 = vld [vmem:[%s1081_s3 + $0x38] sm:$0xff]  ;;  %v164_v22 = vld [vmem:[%s1081_s3 + $0x40] sm:$0xff]  ;;  %v845_v61 = vmov 0.0   ;;  %s848_s21 = smov 32   ;;  %vm280_vm2 = vcmask 130048  }
   0xa   :  { %v42_v20 = vld [vmem:[%s1078_s0 + $0x18] sm:$0xff]  ;;  %v768_v21 = vpack.c.bf16 %v163_v19, %v162_v18  ;;  %v165_v23 = vld [vmem:[%s1081_s3 + $0x48] sm:$0xff]  ;;  %v166_v25 = vld [vmem:[%s1081_s3 + $0x50] sm:$0xff]  ;;  %788 = vmatprep.subr.bf16.mxu0 %v843_v50  ;;  %vm283_vm3 = vcmask 392192   ;;  %vm300_vm4 = vcmask 523264   ;;  %vm472_vm5 = vcmask 64512  }
   0xb   :  { %763 = vmatpush3.bf16.msra.mxu1 %v760_v12  ;;  %v772_v24 = vpack.c.bf16 %v165_v23, %v164_v22  ;;  %v167_v26 = vld [vmem:[%s1081_s3 + $0x58] sm:$0xff]  ;;  %v168_v28 = vld [vmem:[%s1081_s3 + $0x60] sm:$0xff]  ;;  %v169_v29 = vld [vmem:[%s1081_s3 + $0x68] sm:$0xff] }
   0xc   :  { %662 = vmatmul.mubr.msk.f32.vlgmr.msra.gmra.mrb[0].mxu0 %vm54_vm0, %v40_v15  ;;  %765 = vmatprep.subr.bf16.mxu1 %v764_v16  ;;  %v776_v27 = vpack.c.bf16 %v167_v26, %v166_v25  ;;  %v780_v30 = vpack.c.bf16 %v169_v29, %v168_v28  ;;  %v170_v31 = vld [vmem:[%s1081_s3 + $0x70] sm:$0xff]  ;;  %v171_v32 = vld [vmem:[%s1081_s3 + $0x78] sm:$0xff]  ;;  %v593_v34 = vld [vmem:[%s1080_s2] ss:$0 sm:$0xff] }
   0xd   :  { %664 = vmatprep.mubr.msk.f32.mxu0 %vm54_vm0, %v41_v17  ;;  %v784_v33 = vpack.c.bf16 %v171_v32, %v170_v31  ;;  %v285_v47 = vld [vmem:[%s1083_s5] sm:$0xff]  ;;  %v286_v48 = vld [vmem:[%s1083_s5 + $0x8] sm:$0xff]  ;;  %v287_v49 = vld [vmem:[%s1083_s5 + $0x10] sm:$0xff] }
   0xe   :  { %v789_v51 = vpack.c.bf16 %v286_v48, %v285_v47  ;;  %v288_v52 = vld [vmem:[%s1083_s5 + $0x18] sm:$0xff]  ;;  %v289_v54 = vld [vmem:[%s1083_s5 + $0x20] sm:$0xff]  ;;  %v290_v55 = vld [vmem:[%s1083_s5 + $0x28] sm:$0xff] }
   0xf   :  { %767 = vmatpush3.bf16.msra.mxu1 %v764_v16  ;;  %v792_v53 = vpack.c.bf16 %v288_v52, %v287_v49  ;;  %v795_v56 = vpack.c.bf16 %v290_v55, %v289_v54  ;;  %v291_v57 = vld [vmem:[%s1083_s5 + $0x30] sm:$0xff]  ;;  %v292_v58 = vld [vmem:[%s1083_s5 + $0x38] sm:$0xff]  ;;  %v598_v60 = vld [vmem:[%s1082_s4] ss:$0 sm:$0xff]  ;;  %s846_s5 = smov 16   ;;  %s847_s4 = smov 48  }
  0x10   :  { %665 = vmatmul.mubr.msk.f32.gmra.mrb[2].mxu0 %vm54_vm0, %v42_v20  ;;  %769 = vmatprep.subr.bf16.mxu1 %v768_v21  ;;  %v798_v59 = vpack.c.bf16 %v292_v58, %v291_v57  ;;  %v375_v10 = vld [vmem:[%s1085_s7] sm:$0xff]  ;;  %v376_v11 = vld [vmem:[%s1085_s7 + $0x8] sm:$0xff]  ;;  %v377_v18 = vld [vmem:[%s1085_s7 + $0x10] sm:$0xff] }
  0x11   :  { %790 = vmatpush3.bf16.msra.mxu0 %v789_v51  ;;  %721 = vmatprep.mubr.msk.f32.mxu0 %vm844_vm1, %v845_v61  ;;  %v801_v15 = vpack.c.bf16 %v376_v11, %v375_v10  ;;  %v378_v19 = vld [vmem:[%s1085_s7 + $0x18] sm:$0xff]  ;;  %v379_v22 = vld [vmem:[%s1085_s7 + $0x20] sm:$0xff]  ;;  %v380_v23 = vld [vmem:[%s1085_s7 + $0x28] sm:$0xff] }
  0x12   :  { %791 = vmatprep.subr.bf16.mxu0 %v843_v50  ;;  %v381_v25 = vld [vmem:[%s1085_s7 + $0x30] sm:$0xff]  ;;  %v382_v26 = vld [vmem:[%s1085_s7 + $0x38] sm:$0xff]  ;;  %v464_v28 = vld [vmem:[%s1087_s9] sm:$0xff] }
  0x13   :  { %771 = vmatpush3.bf16.msra.mxu1 %v768_v21  ;;  %v804_v21 = vpack.c.bf16 %v378_v19, %v377_v18  ;;  %v599_v29 = vld [vmem:[%s1084_s6] ss:$0 sm:$0xff]  ;;  %s849_s6 = smov [#allocation2]  }
  0x14   :  { %773 = vmatprep.subr.bf16.mxu1 %v772_v24 }
  0x15   :  { %793 = vmatpush3.bf16.msra.mxu0 %v792_v53 }
  0x16   :  { %794 = vmatprep.subr.bf16.mxu0 %v843_v50 }
  0x17   :  { %775 = vmatpush3.bf16.msra.mxu1 %v772_v24  ;;  %v807_v24 = vpack.c.bf16 %v380_v23, %v379_v22 }
  0x18   :  { %777 = vmatprep.subr.bf16.mxu1 %v776_v27 }
  0x19   :  { %796 = vmatpush3.bf16.msra.mxu0 %v795_v56 }
  0x1a   :  { %797 = vmatprep.subr.bf16.mxu0 %v843_v50 }
  0x1b   :  { %779 = vmatpush3.bf16.msra.mxu1 %v776_v27  ;;  %v810_v27 = vpack.c.bf16 %v382_v26, %v381_v25 }
  0x1c   :  { %781 = vmatprep.subr.bf16.mxu1 %v780_v30 }
  0x1d   :  { %799 = vmatpush3.bf16.msra.mxu0 %v798_v59 }
  0x1e   :  { %800 = vmatprep.subr.bf16.mxu0 %v843_v50 }
  0x1f   :  { %783 = vmatpush3.bf16.msra.mxu1 %v780_v30 }
  0x20   :  { %785 = vmatprep.subr.bf16.mxu1 %v784_v33 }
  0x23   :  { %787 = vmatpush3.bf16.msra.mxu1 %v784_v33 }
  0x24   :  { %743 = vmatprep.subr.mxu1 %v845_v61 }
  0xdf   :  { %v663_v35 = vpop.f32.mrb[0].mxu0 }
  0xe0   :  { %v139_v36 = vadd.f32 %v663_v35, %v593_v34  ;;  %v133_v37 = vpop.f32.mrb[1].mxu0 }
  0xe1   :  { %v134_v38 = vadd.f32 %v593_v34, %v133_v37 }
  0xe2   :  { %v153_v41 = vmax.f32 %v139_v36, 0.0 }
  0xe3   :  { %v666_v39 = vpop.f32.mrb[2].mxu0  ;;  %v152_v40 = vmax.f32 %v134_v38, 0.0 }
  0xe4   :  { %v149_v42 = vadd.f32 %v666_v39, %v593_v34  ;;  %v143_v43 = vpop.f32.mrb[3].mxu0  ;;  %v603_v39 = vld [vmem:[%s1088_s10] ss:$0 sm:$0xff] }
  0xe5   :  { %v144_v44 = vadd.f32 %v593_v34, %v143_v43  ;;  %699 = vmatprep.mubr.f32.mxu1 %v152_v40  ;;  %v601_v34 = vld [vmem:[%s1086_s8] ss:$0 sm:$0xff] }
  0xe6   :  { %700 = vmatmul.mubr.f32.vlgmr.msra.gmra.mrb[0].mxu1 %v153_v41  ;;  %v155_v46 = vmax.f32 %v149_v42, 0.0 }
  0xe7   :  { %v154_v45 = vmax.f32 %v144_v44, 0.0  ;;  %744 = vmatpush3.msra.mxu1 %v464_v28 }
  0xe9   :  { %702 = vmatprep.mubr.f32.mxu1 %v154_v45 }
  0xea   :  { %703 = vmatmul.mubr.f32.gmra.mrb[2].mxu1 %v155_v46 }
  0xeb   :  { %745 = vmatprep.mubr.msk.f32.mxu1 %vm844_vm1, %v845_v61 }
 0x1b9   :  { %v701_v62 = vpop.f32.mrb[0].mxu1 }
 0x1ba   :  { %v251_v63 = vadd.f32 %v701_v62, %v598_v60  ;;  %v245_v0 = vpop.f32.mrb[1].mxu1 }
 0x1bb   :  { %v246_v1 = vadd.f32 %v598_v60, %v245_v0 }
 0x1bc   :  { %v265_v2 = vmax.f32 %v251_v63, 0.0 }
 0x1bd   :  { %v704_v3 = vpop.f32.mrb[2].mxu1  ;;  %v264_v12 = vmax.f32 %v246_v1, 0.0 }
 0x1be   :  { %v261_v4 = vadd.f32 %v704_v3, %v598_v60  ;;  %269 = vrot.lane.b32.xlu0 %v265_v2, %s846_s5  ;;  %v255_v5 = vpop.f32.mrb[3].mxu1  ;;  %s585_s5 = sshll.u32 %s849_s6, 4  ;;  %s586_s5 = int_to_ptr.vmem [resolvable:$true] %s585_s5 }
 0x1bf   :  { %v256_v6 = vadd.f32 %v598_v60, %v255_v5  ;;  %s819_s8 = scalar_lea.vmem %s586_s5, 128  ;;  %p824_p1 = scmp.lt.s32.totalorder %s586_s5, %s586_s5 }
 0x1c0   :  { %v267_v7 = vmax.f32 %v261_v4, 0.0  ;;  %p820_p0 = scmp.ne.s32.totalorder %s586_s5, %s819_s8  ;;  %p825_p2 = scmp.lt.s32.totalorder %s819_s8, %s819_s8 }
 0x1c1   :  { %v266_v8 = vmax.f32 %v256_v6, 0.0 }
 0x1c2   :  { %277 = vrot.lane.b32.xlu1 %v267_v7, %s847_s4  ;;  %p826_p3 = por %p825_p2, %p824_p1 }
 0x1c3   :  { %273 = vrot.lane.b32.xlu0 %v266_v8, %s848_s21 }
 0x1c4   :  { %p827_p4 = pnand %p826_p3, %p820_p0 }
 0x230   :  { %v270_v9 = vpop.permute.xlu0 %269 }
 0x231   :  { %v281_v13 = vsel %vm280_vm2, %v264_v12, %v270_v9 }
 0x234   :  { %v278_v16 = vpop.permute.xlu1 %277 }
 0x235   :  { %v274_v14 = vpop.permute.xlu0 %273 }
 0x236   :  { %v282_v17 = vsel %vm54_vm0, %v281_v13, %v274_v14 }
 0x237   :  { %v284_v20 = vsel %vm283_vm3, %v282_v17, %v278_v16 }
 0x238   :  { %722 = vmatmul.mubr.msk.f32.vlgmr.msra.gmra.mrb[4].mxu0 %vm300_vm4, %v284_v20 }
 0x239   :  { %802 = vmatpush3.bf16.msra.mxu0 %v801_v15  ;;  %740 = vmatprep.mubr.msk.f32.mxu0 %vm844_vm1, %v845_v61 }
 0x23a   :  { %803 = vmatprep.subr.bf16.mxu0 %v843_v50 }
 0x23d   :  { %805 = vmatpush3.bf16.msra.mxu0 %v804_v21 }
 0x23e   :  { %806 = vmatprep.subr.bf16.mxu0 %v843_v50 }
 0x241   :  { %808 = vmatpush3.bf16.msra.mxu0 %v807_v24 }
 0x242   :  { %809 = vmatprep.subr.bf16.mxu0 %v843_v50 }
 0x245   :  { %811 = vmatpush3.bf16.msra.mxu0 %v810_v27 }
 0x30b   :  { %v370_v30 = vpop.f32.mrb[4].mxu0 }
 0x30c   :  { %v371_v31 = vadd.f32 %v599_v29, %v370_v30  ;;  %v723_v32 = vpop.f32.mrb[5].mxu0 }
 0x30e   :  { %v374_v33 = vmax.f32 %v371_v31, 0.0 }
 0x310   :  { %741 = vmatmul.mubr.msk.f32.vlgmr.msra.gmra.mrb[6].mxu0 %vm300_vm4, %v374_v33 }
 0x3e3   :  { %v459_v35 = vpop.f32.mrb[6].mxu0 }
 0x3e4   :  { %v460_v36 = vadd.f32 %v601_v34, %v459_v35  ;;  %v742_v37 = vpop.f32.mrb[7].mxu0 }
 0x3e6   :  { %v463_v38 = vmax.f32 %v460_v36, 0.0 }
 0x3e8   :  { %746 = vmatmul.mubr.msk.f32.vlgmr.msra.gmra.mrb[4].mxu1 %vm472_vm5, %v463_v38 }
 0x4bb   :  { %v542_v40 = vpop.f32.mrb[4].mxu1 }
 0x4bc   :  { %v543_v41 = vadd.f32 %v603_v39, %v542_v40  ;;  %v747_v42 = vpop.f32.mrb[5].mxu1 }
 0x4be   :  { %546 = vxpose.xlu1.b32.start.end [1/1] (short) (narrow) %v543_v41, 8 }
 0x53e   :  { %v562_v43 = vpop.trf.xlu1 }
 0x53f   :  { %578 = vst.msk [vmem:[#allocation2] sm:$0xff] %vm472_vm5, %v562_v43 }
 0x540   :  { %830 = shalt.err (!%p827_p4)
}
 0x541   :  { %s831_s10 = scalar_lea.hbm %s1089_s11, 128 }
 0x542   :  { %p832_p5 = scmp.ne.s32.totalorder %s1089_s11, %s831_s10  ;;  %p835_p6 = scmp.lt.u32.totalorder %s831_s10, %s1089_s11 }
 0x544   :  { %p837_p7 = pnand %p835_p6, %p832_p5 }
 0x546   :  { %840 = shalt.err (!%p837_p7)
}
 0x547   :  { %588 = dma.vmem_to_hbm [thread:$0]  %s586_s5, 128, %s1089_s11, [#allocation3]  }
 0x548   :  { %841 = dma.done.wait [#allocation3], 128  }
 0x549   :  { %842 = vsyncadd [#allocation3], 4294967168 }
 0x54a   :  { %592 = vsyncpa [#allocation3], 1 }

</bundles_post_ra>
